<compile_context>
chip_gen: v7x
topology: tpu7x:2x2x1
jax: 0.10.0
libtpu: 0.0.40
codegen_flags: <defaults>
</compile_context>

<pallas_src>
import functools

import jax
import jax.numpy as jnp
from jax.experimental import pallas as pl
from jax.experimental.pallas import tpu as pltpu

LEAKY_SLOPE = 0.2   # nb.fc with batch_norm=True uses LeakyReLU(0.2)
BN_EPS = 1e-5
LANE = 128


def _leaky(x):
    return jnp.maximum(x, LEAKY_SLOPE * x)


def _round_up(x, m):
    return (x + m - 1) // m * m


# --------------------------------- kernel ------------------------------------

def _make_kernel(cfg):
    (off_a, k_a, off_b, off_c, off_j0, off_j0b, off_j1,
     n_fb, nz_box, nz_joint, out_pad) = cfg

    def kernel(xfb_ref, cc_ref, w_ref, bias_ref, out_ref):
        dot = functools.partial(jnp.dot, preferred_element_type=jnp.float32)

        def w(off, k, n):                 # static VMEM view into the weight slab
            return w_ref[off:off + k, :n]

        def b(row, n):                    # static view into the bias slab
            return bias_ref[row:row + 1, :n]

        # layer A: block-diag(fine0, bbox0) on [roi_feat | boxes/480]
        h1 = _leaky(dot(xfb_ref[...], w(off_a, k_a, n_fb)) + b(0, n_fb)
                    ).astype(jnp.bfloat16)
        # layer B: block-diag(fine1, bbox1)  ->  h2 = [feat_fine | h_bbox2]
        h2 = _leaky(dot(h1, w(off_b, n_fb, n_fb)) + b(1, n_fb)
                    ).astype(jnp.bfloat16)
        # layer C: third bbox layer (weight has zero rows for the fine half of h2)
        fb3 = _leaky(dot(h2, w(off_c, n_fb, nz_box)) + b(2, nz_box)
                     ).astype(jnp.bfloat16)
        # joint layer 0: fine part of h2 + feat_bbox, plus the precomputed coarse
        # contribution (feat_coarse_rep @ wj0c) added as an f32 term.
        pre = (dot(h2, w(off_j0, n_fb, nz_joint))
               + dot(fb3, w(off_j0b, nz_box, nz_joint))
               + cc_ref[...] + b(3, nz_joint))
        hj = _leaky(pre).astype(jnp.bfloat16)
        # joint layer 1: lane-dense (128-col padded) bf16 output store.
        out_ref[...] = _leaky(dot(hj, w(off_j1, nz_joint, out_pad))
                              + b(4, out_pad)).astype(out_ref.dtype)

    return kernel


# ----------------------------- parameter setup ------------------------------

def _init_fc_layer(key, nc_in, nc_out):
    kw, kb, kg, kbe, km, kv = jax.random.split(key, 6)
    return dict(
        w=0.02 * jax.random.normal(kw, (nc_out, nc_in), jnp.float32),   # torch (out, in)
        b=0.01 * jax.random.normal(kb, (nc_out,), jnp.float32),
        gamma=1.0 + 0.1 * jax.random.normal(kg, (nc_out,), jnp.float32),
        beta=0.1 * jax.random.normal(kbe, (nc_out,), jnp.float32),
        mean=0.1 * jax.random.normal(km, (nc_out,), jnp.float32),
        var=0.5 + 0.1 * jnp.abs(jax.random.normal(kv, (nc_out,), jnp.float32)),
    )


def init_fc_stack(key, nc_in, nc_out, n_layers):
    keys = jax.random.split(key, n_layers)
    return [_init_fc_layer(keys[i], nc_in if i == 0 else nc_out, nc_out)
            for i in range(n_layers)]


def make_roi_encoder_params(key, nc_inp_fine, nc_inp_coarse,
                            nz_joint=32, nz_roi=32, nz_coarse=32, nz_box=16):
    kf, kc, kb, kj = jax.random.split(key, 4)
    return dict(
        fine=init_fc_stack(kf, nc_inp_fine, nz_roi, 2),
        coarse=init_fc_stack(kc, nc_inp_coarse, nz_coarse, 2),
        bbox=init_fc_stack(kb, 4, nz_box, 3),
        joint=init_fc_stack(kj, nz_roi + nz_coarse + nz_box, nz_joint, 2),
    )


def _fold_bn(layer):
    """Fold eval-mode BatchNorm1d into the preceding Linear. Returns (in,out) W, (1,out) b."""
    scale = layer["gamma"] / jnp.sqrt(layer["var"] + BN_EPS)
    w_eff = (layer["w"] * scale[:, None]).T
    b_eff = ((layer["b"] - layer["mean"]) * scale + layer["beta"])[None, :]
    return w_eff, b_eff


# --------------------------------- wrapper -----------------------------------

def roi_encoder_forward(params, roi_img_feat, img_feat_coarse, rois_inp,
                        use_context=True, tile_r=1024):
    nz_roi = params["fine"][-1]["w"].shape[0]
    nz_coarse = params["coarse"][-1]["w"].shape[0]
    nz_box = params["bbox"][-1]["w"].shape[0]
    nz_joint = params["joint"][-1]["w"].shape[0]
    nc_fine = roi_img_feat.shape[1]
    R = roi_img_feat.shape[0]

    wf0, bf0 = _fold_bn(params["fine"][0])
    wf1, bf1 = _fold_bn(params["fine"][1])
    wc0, bc0 = _fold_bn(params["coarse"][0])
    wc1, bc1 = _fold_bn(params["coarse"][1])
    wb0, bb0 = _fold_bn(params["bbox"][0])
    wb1, bb1 = _fold_bn(params["bbox"][1])
    wb2, bb2 = _fold_bn(params["bbox"][2])
    wj0, bj0 = _fold_bn(params["joint"][0])
    wj1, bj1 = _fold_bn(params["joint"][1])

    # Split joint layer-0 weight by the reference concat order [fine | coarse | bbox].
    wj0f = wj0[:nz_roi]
    wj0c = wj0[nz_roi:nz_roi + nz_coarse]
    wj0b = wj0[nz_roi + nz_coarse:]
    if not use_context:
        # Zeroing the joint-layer contributions is exactly feat*0 in the reference.
        wj0b = jnp.zeros_like(wj0b)

    # --- coarse branch hoisted out of the kernel (tiny B-sized XLA work): -------
    # encoder_coarse, torch.index_select, and its (linear) joint-layer-0 term.
    hc = _leaky(img_feat_coarse @ wc0 + bc0)
    feat_coarse = _leaky(hc @ wc1 + bc1)                      # (B, nz_coarse), f32
    idx = rois_inp[:, 0].astype(jnp.int32)
    if use_context:
        coarse_contrib = (feat_coarse @ wj0c)[idx]            # (R, nz_joint), f32
    else:
        coarse_contrib = jnp.zeros((R, nz_joint), jnp.float32)

    # --- single bf16 weight slab (16-row-aligned blocks) + single f32 bias slab --
    n_fb = nz_roi + nz_box
    k_a = _round_up(nc_fine + 4, 16)
    out_pad = _round_up(max(nz_joint, LANE), LANE)
    slab_cols = _round_up(max(n_fb, nz_box, nz_joint, out_pad), LANE)

    off_a = 0
    off_b = off_a + k_a
    off_c = off_b + _round_up(n_fb, 16)
    off_j0 = off_c + _round_up(n_fb, 16)
    off_j0b = off_j0 + _round_up(n_fb, 16)
    off_j1 = off_j0b + _round_up(nz_box, 16)
    slab_rows = off_j1 + _round_up(nz_joint, 16)

    slab = jnp.zeros((slab_rows, slab_cols), jnp.float32)
    # layer A: block-diag(fine0, bbox0); bbox rows act on boxes already scaled by 1/480
    slab = slab.at[off_a:off_a + nc_fine, :nz_roi].set(wf0)
    slab = slab.at[off_a + nc_fine:off_a + nc_fine + 4, nz_roi:n_fb].set(wb0)
    # layer B: block-diag(fine1, bbox1)
    slab = slab.at[off_b:off_b + nz_roi, :nz_roi].set(wf1)
    slab = slab.at[off_b + nz_roi:off_b + n_fb, nz_roi:n_fb].set(wb1)
    # layer C: bbox layer 3 (zero rows for the fine half of h2)
    slab = slab.at[off_c + nz_roi:off_c + n_fb, :nz_box].set(wb2)
    # joint layer 0: fine part of h2 (bbox2 rows stay zero) + bbox part
    slab = slab.at[off_j0:off_j0 + nz_roi, :nz_joint].set(wj0f)
    slab = slab.at[off_j0b:off_j0b + nz_box, :nz_joint].set(wj0b)
    # joint layer 1, output columns zero-padded to out_pad (lane-dense store)
    slab = slab.at[off_j1:off_j1 + nz_joint, :nz_joint].set(wj1)
    slab = slab.astype(jnp.bfloat16)

    bias_pack = jnp.zeros((8, slab_cols), jnp.float32)
    bias_pack = bias_pack.at[0, :nz_roi].set(bf0[0]).at[0, nz_roi:n_fb].set(bb0[0])
    bias_pack = bias_pack.at[1, :nz_roi].set(bf1[0]).at[1, nz_roi:n_fb].set(bb1[0])
    bias_pack = bias_pack.at[2, :nz_box].set(bb2[0])
    bias_pack = bias_pack.at[3, :nz_joint].set(bj0[0])
    bias_pack = bias_pack.at[4, :nz_joint].set(bj1[0])

    # --- ROI-row tiling: large tiles, but keep >= 2 grid steps when possible -----
    r16 = _round_up(max(R, 1), 16)
    half16 = (r16 // 32) * 16                 # largest 16-multiple <= r16/2
    cap = half16 if half16 >= 16 else r16     # allow >=2 steps (v7x: both TCs)
    tile = max(16, min(_round_up(tile_r, 16), cap))
    r_pad = _round_up(r16, tile)
    grid = (r_pad // tile,)

    # --- per-ROI inputs (padded rows are zero; their outputs are sliced away) ----
    x_fb = jnp.zeros((r_pad, k_a), jnp.float32)
    x_fb = x_fb.at[:R, :nc_fine].set(roi_img_feat)
    x_fb = x_fb.at[:R, nc_fine:nc_fine + 4].set(rois_inp[:, 1:5] / 480.0)  # f32 scale
    x_fb = x_fb.astype(jnp.bfloat16)

    cc = jnp.zeros((r_pad, nz_joint), jnp.float32).at[:R].set(coarse_contrib)

    cfg = (off_a, k_a, off_b, off_c, off_j0, off_j0b, off_j1,
           n_fb, nz_box, nz_joint, out_pad)
    kernel = _make_kernel(cfg)

    def per_roi(width):
        return pl.BlockSpec((tile, width), lambda i: (i, 0))

    def resident(shape):
        return pl.BlockSpec(shape, lambda i: (0, 0))

    out = pl.pallas_call(
        kernel,
        grid=grid,
        out_shape=jax.ShapeDtypeStruct((r_pad, out_pad), jnp.bfloat16),
        in_specs=[per_roi(k_a),                # [roi feats | boxes/480]  bf16
                  per_roi(nz_joint),           # coarse joint-0 contribution, f32
                  resident(slab.shape),        # all weights, one bf16 slab
                  resident(bias_pack.shape)],  # all biases, one f32 slab
        out_specs=per_roi(out_pad),
        compiler_params=pltpu.CompilerParams(
            dimension_semantics=("parallel",)),   # 2 TCs on v7x; no-op v5e/v6e
    )(x_fb, cc, slab, bias_pack)

    return out[:R, :nz_joint]


# ------------------------------ pure-JAX reference ---------------------------

def _ref_fc_stack(x, layers):
    for lyr in layers:
        y = x @ lyr["w"].T + lyr["b"]
        y = (y - lyr["mean"]) / jnp.sqrt(lyr["var"] + BN_EPS) * lyr["gamma"] + lyr["beta"]
        x = jnp.where(y > 0, y, LEAKY_SLOPE * y)
    return x


def ref_forward(params, roi_img_feat, img_feat_coarse, rois_inp, use_context=True):
    feat_fine = _ref_fc_stack(roi_img_feat, params["fine"])
    feat_coarse = _ref_fc_stack(img_feat_coarse, params["coarse"])
    feat_bbox = _ref_fc_stack(rois_inp[:, 1:5] / 480.0, params["bbox"])
    if not use_context:
        feat_bbox = feat_bbox * 0
        feat_coarse = feat_coarse * 0
    idx = rois_inp[:, 0].astype(jnp.int32)
    feat_coarse_rep = feat_coarse[idx]
    x = jnp.concatenate([feat_fine, feat_coarse_rep, feat_bbox], axis=1)
    return _ref_fc_stack(x, params["joint"])


# ----------------------------------- main -------------------------------------

if __name__ == "__main__":
    key = jax.random.PRNGKey(0)
    R, B = 24, 2                      # 24 rois over a batch of 2 images (grid = 2 steps)
    nc_inp_fine, nc_inp_coarse = 64, 32
    nz_joint, nz_roi, nz_coarse, nz_box = 32, 32, 32, 16

    kp, k1, k2, k3, k4 = jax.random.split(key, 5)
    params = make_roi_encoder_params(kp, nc_inp_fine, nc_inp_coarse,
                                     nz_joint, nz_roi, nz_coarse, nz_box)

    roi_img_feat = jax.random.normal(k1, (R, nc_inp_fine), jnp.float32)
    img_feat_coarse = jax.random.normal(k2, (B, nc_inp_coarse), jnp.float32)
    batch_idx = jax.random.randint(k3, (R, 1), 0, B).astype(jnp.float32)
    boxes = jax.random.uniform(k4, (R, 4), jnp.float32, minval=0.0, maxval=480.0)
    rois_inp = jnp.concatenate([batch_idx, boxes], axis=1)   # (R, 5): [b, x1, y1, x2, y2]

    out = roi_encoder_forward(params, roi_img_feat, img_feat_coarse, rois_inp,
                              use_context=True)
    out = jax.block_until_ready(out)

    ref = ref_forward(params, roi_img_feat, img_feat_coarse, rois_inp,
                      use_context=True)
    assert out.shape == (R, nz_joint), out.shape
    # bf16 matmul operands + bf16 output store (f32 accumulation) => loosened tolerance.
    out_f32 = out.astype(jnp.float32)
    assert jnp.allclose(out_f32, ref, atol=3e-2, rtol=3e-2), \
        float(jnp.max(jnp.abs(out_f32 - ref)))

    print("KERNEL_OK")
</pallas_src>

<mosaic_0001>
module attributes {stable_mosaic.version = 11 : i64} {
  func.func @kernel(%arg0: i32, %arg1: memref<16x80xbf16, #tpu.memory_space<vmem>>, %arg2: memref<16x32xf32, #tpu.memory_space<vmem>>, %arg3: memref<272x128xbf16, #tpu.memory_space<vmem>>, %arg4: memref<8x128xf32, #tpu.memory_space<vmem>>, %arg5: memref<16x128xbf16, #tpu.memory_space<vmem>>) attributes {dimension_semantics = [#tpu.dimension_semantics<parallel>], iteration_bounds = array<i64: 2>, scalar_prefetch = 0 : i64, scratch_operands = 0 : i64, tpu.core_type = #tpu.core_type<tc>, window_params = [{transform_indices = @transform_0, window_bounds = array<i64: 16, 80>}, {transform_indices = @transform_1, window_bounds = array<i64: 16, 32>}, {pipeline_mode = #tpu.pipeline_mode<synchronous>, transform_indices = @transform_2, window_bounds = array<i64: 272, 128>}, {pipeline_mode = #tpu.pipeline_mode<synchronous>, transform_indices = @transform_3, window_bounds = array<i64: 8, 128>}, {transform_indices = @transform_4, window_bounds = array<i64: 16, 128>}]} {
    %c0 = arith.constant 0 : index
    %c0_0 = arith.constant 0 : index
    %0 = vector.load %arg1[%c0, %c0_0] : memref<16x80xbf16, #tpu.memory_space<vmem>>, vector<16x80xbf16>
    %c0_1 = arith.constant 0 : index
    %c0_2 = arith.constant 0 : index
    %1 = vector.load %arg3[%c0_1, %c0_2] : memref<272x128xbf16, #tpu.memory_space<vmem>>, vector<80x48xbf16>
    %cst = arith.constant dense<0.000000e+00> : vector<16x48xf32>
    %2 = tpu.matmul %0, %1, %cst {dimension_numbers = #tpu.dot_dimension_numbers<[1], [0], [0], [1], [0, 0, 1, 1], [], []>} : vector<16x80xbf16>, vector<80x48xbf16>, vector<16x48xf32> -> vector<16x48xf32>
    %c0_3 = arith.constant 0 : index
    %c0_4 = arith.constant 0 : index
    %3 = vector.load %arg4[%c0_3, %c0_4] : memref<8x128xf32, #tpu.memory_space<vmem>>, vector<1x48xf32>
    %4 = vector.broadcast %3 : vector<1x48xf32> to vector<16x48xf32>
    %5 = arith.addf %2, %4 : vector<16x48xf32>
    %cst_5 = arith.constant 2.000000e-01 : f32
    %6 = vector.broadcast %cst_5 : f32 to vector<16x48xf32>
    %7 = arith.mulf %6, %5 : vector<16x48xf32>
    %8 = arith.maximumf %5, %7 : vector<16x48xf32>
    %9 = arith.truncf %8 : vector<16x48xf32> to vector<16x48xbf16>
    %c80 = arith.constant 80 : index
    %c0_6 = arith.constant 0 : index
    %10 = vector.load %arg3[%c80, %c0_6] : memref<272x128xbf16, #tpu.memory_space<vmem>>, vector<48x48xbf16>
    %cst_7 = arith.constant dense<0.000000e+00> : vector<16x48xf32>
    %11 = tpu.matmul %9, %10, %cst_7 {dimension_numbers = #tpu.dot_dimension_numbers<[1], [0], [0], [1], [0, 0, 1, 1], [], []>} : vector<16x48xbf16>, vector<48x48xbf16>, vector<16x48xf32> -> vector<16x48xf32>
    %c1 = arith.constant 1 : index
    %c0_8 = arith.constant 0 : index
    %12 = vector.load %arg4[%c1, %c0_8] : memref<8x128xf32, #tpu.memory_space<vmem>>, vector<1x48xf32>
    %13 = vector.broadcast %12 : vector<1x48xf32> to vector<16x48xf32>
    %14 = arith.addf %11, %13 : vector<16x48xf32>
    %cst_9 = arith.constant 2.000000e-01 : f32
    %15 = vector.broadcast %cst_9 : f32 to vector<16x48xf32>
    %16 = arith.mulf %15, %14 : vector<16x48xf32>
    %17 = arith.maximumf %14, %16 : vector<16x48xf32>
    %18 = arith.truncf %17 : vector<16x48xf32> to vector<16x48xbf16>
    %c128 = arith.constant 128 : index
    %c0_10 = arith.constant 0 : index
    %19 = vector.load %arg3[%c128, %c0_10] : memref<272x128xbf16, #tpu.memory_space<vmem>>, vector<48x16xbf16>
    %cst_11 = arith.constant dense<0.000000e+00> : vector<16x16xf32>
    %20 = tpu.matmul %18, %19, %cst_11 {dimension_numbers = #tpu.dot_dimension_numbers<[1], [0], [0], [1], [0, 0, 1, 1], [], []>} : vector<16x48xbf16>, vector<48x16xbf16>, vector<16x16xf32> -> vector<16x16xf32>
    %c2 = arith.constant 2 : index
    %c0_12 = arith.constant 0 : index
    %21 = vector.load %arg4[%c2, %c0_12] : memref<8x128xf32, #tpu.memory_space<vmem>>, vector<1x16xf32>
    %22 = vector.broadcast %21 : vector<1x16xf32> to vector<16x16xf32>
    %23 = arith.addf %20, %22 : vector<16x16xf32>
    %cst_13 = arith.constant 2.000000e-01 : f32
    %24 = vector.broadcast %cst_13 : f32 to vector<16x16xf32>
    %25 = arith.mulf %24, %23 : vector<16x16xf32>
    %26 = arith.maximumf %23, %25 : vector<16x16xf32>
    %27 = arith.truncf %26 : vector<16x16xf32> to vector<16x16xbf16>
    %c176 = arith.constant 176 : index
    %c0_14 = arith.constant 0 : index
    %28 = vector.load %arg3[%c176, %c0_14] : memref<272x128xbf16, #tpu.memory_space<vmem>>, vector<48x32xbf16>
    %cst_15 = arith.constant dense<0.000000e+00> : vector<16x32xf32>
    %29 = tpu.matmul %18, %28, %cst_15 {dimension_numbers = #tpu.dot_dimension_numbers<[1], [0], [0], [1], [0, 0, 1, 1], [], []>} : vector<16x48xbf16>, vector<48x32xbf16>, vector<16x32xf32> -> vector<16x32xf32>
    %c224 = arith.constant 224 : index
    %c0_16 = arith.constant 0 : index
    %30 = vector.load %arg3[%c224, %c0_16] : memref<272x128xbf16, #tpu.memory_space<vmem>>, vector<16x32xbf16>
    %cst_17 = arith.constant dense<0.000000e+00> : vector<16x32xf32>
    %31 = tpu.matmul %27, %30, %cst_17 {dimension_numbers = #tpu.dot_dimension_numbers<[1], [0], [0], [1], [0, 0, 1, 1], [], []>} : vector<16x16xbf16>, vector<16x32xbf16>, vector<16x32xf32> -> vector<16x32xf32>
    %32 = arith.addf %29, %31 : vector<16x32xf32>
    %c0_18 = arith.constant 0 : index
    %c0_19 = arith.constant 0 : index
    %33 = vector.load %arg2[%c0_18, %c0_19] : memref<16x32xf32, #tpu.memory_space<vmem>>, vector<16x32xf32>
    %34 = arith.addf %32, %33 : vector<16x32xf32>
    %c3 = arith.constant 3 : index
    %c0_20 = arith.constant 0 : index
    %35 = vector.load %arg4[%c3, %c0_20] : memref<8x128xf32, #tpu.memory_space<vmem>>, vector<1x32xf32>
    %36 = vector.broadcast %35 : vector<1x32xf32> to vector<16x32xf32>
    %37 = arith.addf %34, %36 : vector<16x32xf32>
    %cst_21 = arith.constant 2.000000e-01 : f32
    %38 = vector.broadcast %cst_21 : f32 to vector<16x32xf32>
    %39 = arith.mulf %38, %37 : vector<16x32xf32>
    %40 = arith.maximumf %37, %39 : vector<16x32xf32>
    %41 = arith.truncf %40 : vector<16x32xf32> to vector<16x32xbf16>
    %c240 = arith.constant 240 : index
    %c0_22 = arith.constant 0 : index
    %42 = vector.load %arg3[%c240, %c0_22] : memref<272x128xbf16, #tpu.memory_space<vmem>>, vector<32x128xbf16>
    %cst_23 = arith.constant dense<0.000000e+00> : vector<16x128xf32>
    %43 = tpu.matmul %41, %42, %cst_23 {dimension_numbers = #tpu.dot_dimension_numbers<[1], [0], [0], [1], [0, 0, 1, 1], [], []>} : vector<16x32xbf16>, vector<32x128xbf16>, vector<16x128xf32> -> vector<16x128xf32>
    %c4 = arith.constant 4 : index
    %c0_24 = arith.constant 0 : index
    %44 = vector.load %arg4[%c4, %c0_24] : memref<8x128xf32, #tpu.memory_space<vmem>>, vector<1x128xf32>
    %45 = vector.broadcast %44 : vector<1x128xf32> to vector<16x128xf32>
    %46 = arith.addf %43, %45 : vector<16x128xf32>
    %cst_25 = arith.constant 2.000000e-01 : f32
    %47 = vector.broadcast %cst_25 : f32 to vector<16x128xf32>
    %48 = arith.mulf %47, %46 : vector<16x128xf32>
    %49 = arith.maximumf %46, %48 : vector<16x128xf32>
    %50 = arith.truncf %49 : vector<16x128xf32> to vector<16x128xbf16>
    %c0_26 = arith.constant 0 : index
    %c0_27 = arith.constant 0 : index
    %51 = vector.load %arg5[%c0_26, %c0_27] : memref<16x128xbf16, #tpu.memory_space<vmem>>, vector<16x128xbf16>
    tpu.vector_store %arg5[%c0_26, %c0_27], %50 {strides = array<i32>} : memref<16x128xbf16, #tpu.memory_space<vmem>>, vector<16x128xbf16>,
    return
  }
  func.func @transform_0(%arg0: i32) -> (i32, i32) {
    %c0_i32 = arith.constant 0 : i32
    %c0_i32_0 = arith.constant 0 : i32
    return %arg0, %c0_i32 : i32, i32
  }
  func.func @transform_1(%arg0: i32) -> (i32, i32) {
    %c0_i32 = arith.constant 0 : i32
    %c0_i32_0 = arith.constant 0 : i32
    return %arg0, %c0_i32 : i32, i32
  }
  func.func @transform_2(%arg0: i32) -> (i32, i32) {
    %c0_i32 = arith.constant 0 : i32
    %c0_i32_0 = arith.constant 0 : i32
    %c0_i32_1 = arith.constant 0 : i32
    return %c0_i32, %c0_i32_0 : i32, i32
  }
  func.func @transform_3(%arg0: i32) -> (i32, i32) {
    %c0_i32 = arith.constant 0 : i32
    %c0_i32_0 = arith.constant 0 : i32
    %c0_i32_1 = arith.constant 0 : i32
    return %c0_i32, %c0_i32_0 : i32, i32
  }
  func.func @transform_4(%arg0: i32) -> (i32, i32) {
    %c0_i32 = arith.constant 0 : i32
    %c0_i32_0 = arith.constant 0 : i32
    return %arg0, %c0_i32 : i32, i32
  }
}

</mosaic_0001>

<bundles_post_ra>
// kernel: tpu_custom_call.1
= control target key start
LH: loop header
LB: loop body
LE: loop exit
PB: predicated region body
PF: predicated region fallthrough
CT: control target
= control target key end

     0   :  { %s1606_s0 = inlined_call_operand.hbm [shape: bf16[32,80], index: 0, kind: input, shape index: {}]   ;;  %s1607_s1 = inlined_call_operand.hbm [shape: f32[32,32], index: 1, kind: input, shape index: {}]   ;;  %s1608_s2 = inlined_call_operand.hbm [shape: bf16[272,128], index: 2, kind: input, shape index: {}]   ;;  %s1609_s3 = inlined_call_operand.vmem [shape: f32[8,128], index: 3, kind: input, shape index: {}]   ;;  %s1610_s4 = inlined_call_operand.hbm [shape: bf16[32,128], index: 4, kind: output, shape index: {}]  }
   0x1   :  { %1614 = sst [smem:[#allocation13_spill]] %s1606_s0 }
   0x2   :  { %1615 = sst [smem:[#allocation14_spill]] %s1608_s2 }
   0x3   :  { %9 = vsyncpa [#allocation3], 0 }
   0x4   :  { %11 = vsyncpa [#allocation3 + $0x1], 0 }
   0x5   :  { %12 = vsyncpa [#allocation6], 0 }
   0x6   :  { %14 = vsyncpa [#allocation6 + $0x1], 0 }
   0x7   :  { %15 = vsyncpa [#allocation4], 0 }
   0x8   :  { %17 = vsyncpa [#allocation4 + $0x1], 0  ;;  %s1297_s15 = smov 0   ;;  %s1299_s16 = smov 0  }
   0x9   :  { %s1301_s17 = smov 0   ;;  %s1303_s18 = smov 0  }
   0xa LB: > { %s1318_s19 = sadd.s32 4294967295, %s1258_s18   ;;  %s866_s20 = sadd.s32 4294967294, %s1258_s18   ;;  %s1258_s18 = sphi %s1303_s18, %s1634_s18   ;;  %s1254_s17 = sphi %s1301_s17, %s1633_s17   ;;  %s1250_s16 = sphi %s1299_s16, %s1632_s16   ;;  %s1246_s15 = sphi %s1297_s15, %s1631_s15  }
   0xb   : > { %p43_p0 = scmp.ne.s32.totalorder %s1250_s16, %s1246_s15  ;;  %p1611_p1 = scmp.eq.s32.totalorder %s1318_s19, 0 }
   0xc   : > { %p141_p3 = scmp.eq.s32.totalorder %s866_s20, 1  ;;  %p867_p5 = scmp.ge.s32.totalorder %s1258_s18, 1 }
   0xd   : > { %p1327_p4 = por %p1611_p1, %p43_p0  ;;  %p148_p7 = scmp.lt.s32.totalorder %s1258_s18, 3 }
   0xe   : > { %p1332_p6 = por %p141_p3, %p43_p0  ;;  %s1260_s24 = smov [#allocation7]  }
   0xf   : > { %s1616_s21 = scalar_select %p1327_p4, 1, 0 }
  0x10   : > { %s1617_s22 = scalar_select %p1332_p6, 1, 0 }
  0x11   : > { %p1337_p8 = pnand %p867_p5, %p148_p7  ;;  %s160_s25 = sshll.u32 %s1260_s24, 4  ;;  %s1341_s25 = int_to_ptr.vmem [resolvable:$true] %s160_s25 }
  0x12   : > { %s1353_s27 = sadd.s32 1, %s1258_s18   ;;  %s30_s28 = sadd.s32 1, %s1254_s17 }
  0x13   : > { %s1618_s23 = scalar_select %p1337_p8, 1, 0 }
  0x14   : > { %p1018_p9 = pneg %p1337_p8  ;;  %s27_s29 = ssub.s32 %s1258_s18, %s1353_s27 }
  0x15   : > { %s1620_s2 = sld [smem:[#allocation14_spill]] }
  0x16   : > { %p1348_p11 = pnand %p1018_p9, %p1611_p1 }
  0x18   : > { %p1098_p13 = pneg %p1348_p11 }
  0x1b   : > { %s1096_s6 = scalar_lea.hbm %s1620_s2, 2176 }
  0x1c   : > { %p1097_p12 = scmp.ne.s32.totalorder %s1620_s2, %s1096_s6  ;;  %p1103_p5 = scmp.lt.u32.totalorder %s1096_s6, %s1620_s2 }
  0x1e   : > { %p1099_p0 = pnand %p1098_p13, %p1097_p12 }
  0x20   : > { %p1100_p3 = pneg %p1099_p0 }
  0x22   : > { %p1105_p7 = pnand %p1103_p5, %p1100_p3 }
  0x24   : > { %1108 = shalt.err (!%p1105_p7)
}
  0x25   : > { %s1109_s11 = scalar_lea.vmem %s1341_s25, 2176  ;;  %p1117_p2 = scmp.lt.s32.totalorder %s1341_s25, %s1341_s25 }
  0x26   : > { %p1110_p9 = scmp.ne.s32.totalorder %s1341_s25, %s1109_s11  ;;  %p1118_p6 = scmp.lt.s32.totalorder %s1109_s11, %s1109_s11 }
  0x28   : > { %p1112_p10 = pnand %p1110_p9, %p1098_p13  ;;  %p1119_p4 = por %p1118_p6, %p1117_p2 }
  0x2a   : > { %p1113_p1 = pneg %p1112_p10 }
  0x2c   : > { %p1120_p8 = pnand %p1119_p4, %p1113_p1 }
  0x2e   : > { %1123 = shalt.err (!%p1120_p8)
}
  0x2f   : > { %s1261_s12 = smov 64   ;;  %s1262_s13 = smov 4  }
  0x30   : > { %1021 = dma.hbm_to_vmem [thread:$0]  (!%p1348_p11), %s1620_s2, 2176, %s1341_s25, [#allocation6], %s1261_s12, %s1261_s12, %s1262_s13  }
  0x31   : > { %p28_p1 = scmp.eq.s32.totalorder %s27_s29, 0  ;;  %p37_p2 = scmp.ne.s32.totalorder %s1254_s17, %s1250_s16 }
  0x32   : > { %p38_p4 = scmp.eq.s32.totalorder %s1258_s18, 0  ;;  %p1034_p6 = scmp.lt.s32.totalorder %s1258_s18, 2 }
  0x33   : > { %s1387_s24 = scalar_select %p28_p1, %s1254_s17, %s30_s28  }
  0x34   : > { %p39_p8 = por %p38_p4, %p37_p2  ;;  %p1621_p10 = scmp.eq.s32.totalorder %s1318_s19, 1 }
  0x35   : > { %s1396_s26 = sand.u32 1, %s1254_s17   ;;  %s917_s5 = sshll.u32 %s1258_s18, 7 }
  0x36   : > { %p1391_p12 = por %p1621_p10, %p37_p2  ;;  %s870_s6 = sshll.u32 %s1396_s26, 3 }
  0x37   : > { %s1623_s0 = sld [smem:[#allocation13_spill]]  ;;  %s181_s28 = scalar_lea.vmem [#allocation2], %s870_s6 }
  0x38   : > { %s188_s8 = sshll.u32 %s181_s28, 4  ;;  %p1405_p11 = pnand %p1034_p6, %p39_p8  ;;  %s1409_s8 = int_to_ptr.vmem [resolvable:$true] %s188_s8 }
  0x39   : > { %s198_s10 = sand.u32 1, %s1258_s18   ;;  %s178_s11 = scalar_lea.sflag [#allocation3], %s1396_s26 }
  0x3a   : > { %p1126_p0 = pneg %p1405_p11 }
  0x3d   : > { %s1403_s29 = scalar_lea.hbm %s1623_s0, %s917_s5  ;;  %s1129_s6 = scalar_lea.hbm %s1623_s0, 256 }
  0x3e   : > { %s1124_s14 = scalar_lea.hbm %s1403_s29, 128  ;;  %p1130_p7 = scmp.lt.u32.totalorder %s1403_s29, %s1623_s0 }
  0x3f   : > { %p1125_p13 = scmp.ne.s32.totalorder %s1403_s29, %s1124_s14  ;;  %p1131_p9 = scmp.lt.u32.totalorder %s1129_s6, %s1124_s14 }
  0x40   : > { %p1133_p2 = scmp.lt.u32.totalorder %s1124_s14, %s1403_s29 }
  0x41   : > { %p1127_p3 = pnand %p1126_p0, %p1125_p13  ;;  %p1132_p1 = por %p1131_p9, %p1130_p7 }
  0x43   : > { %p1128_p5 = pneg %p1127_p3  ;;  %p1134_p4 = por %p1133_p2, %p1132_p1 }
  0x45   : > { %p1135_p6 = pnand %p1134_p4, %p1128_p5 }
  0x47   : > { %1138 = shalt.err (!%p1135_p6)
}
  0x48   : > { %s1139_s28 = scalar_lea.vmem %s1409_s8, 128  ;;  %s1263_s20 = smov [#allocation2]  }
  0x49   : > { %p1140_p8 = scmp.ne.s32.totalorder %s1409_s8, %s1139_s28  ;;  %s1144_s5 = sshll.u32 %s1263_s20, 4  ;;  %s1145_s5 = int_to_ptr.vmem [resolvable:$false] %s1144_s5 }
  0x4a   : > { %s1146_s25 = scalar_lea.vmem %s1145_s5, 256  ;;  %p1147_p3 = scmp.lt.s32.totalorder %s1409_s8, %s1145_s5 }
  0x4b   : > { %p1142_p10 = pnand %p1140_p8, %p1126_p0  ;;  %p1148_p7 = scmp.lt.s32.totalorder %s1146_s25, %s1139_s28 }
  0x4d   : > { %p1143_p13 = pneg %p1142_p10  ;;  %p1149_p9 = por %p1148_p7, %p1147_p3 }
  0x4f   : > { %p1150_p1 = pnand %p1149_p9, %p1143_p13 }
  0x51   : > { %1153 = shalt.err (!%p1150_p1)
}
  0x52   : > { %1025 = dma.hbm_to_vmem [thread:$0]  (!%p1405_p11), %s1403_s29, 128, %s1409_s8, %s178_s11, %s1261_s12, %s1261_s12, %s1262_s13  }
  0x53   : > { %s873_s14 = sshll.u32 %s1396_s26, 4  ;;  %s918_s6 = sshll.u32 %s1258_s18, 8 }
  0x54   : > { %s1448_s20 = scalar_lea.hbm %s1607_s1, %s918_s6  ;;  %s202_s5 = scalar_lea.vmem [#allocation5], %s873_s14 }
  0x55   : > { %s209_s25 = sshll.u32 %s202_s5, 4  ;;  %s1454_s0 = scalar_lea.sflag [#allocation6], %s198_s10  ;;  %s1450_s25 = int_to_ptr.vmem [resolvable:$true] %s209_s25 }
  0x56   : > { %s1154_s2 = scalar_lea.hbm %s1448_s20, 256  ;;  %s1159_s26 = scalar_lea.hbm %s1607_s1, 512 }
  0x57   : > { %p1155_p5 = scmp.ne.s32.totalorder %s1448_s20, %s1154_s2  ;;  %p1160_p6 = scmp.lt.u32.totalorder %s1448_s20, %s1607_s1 }
  0x58   : > { %p1161_p8 = scmp.lt.u32.totalorder %s1159_s26, %s1154_s2  ;;  %p1163_p13 = scmp.lt.u32.totalorder %s1154_s2, %s1448_s20 }
  0x59   : > { %p1157_p2 = pnand %p1155_p5, %p1126_p0 }
  0x5a   : > { %p1162_p10 = por %p1161_p8, %p1160_p6 }
  0x5b   : > { %p1158_p4 = pneg %p1157_p2 }
  0x5c   : > { %p1164_p3 = por %p1163_p13, %p1162_p10 }
  0x5e   : > { %p1165_p7 = pnand %p1164_p3, %p1158_p4 }
  0x60   : > { %1168 = shalt.err (!%p1165_p7)
}
  0x61   : > { %s1169_s10 = scalar_lea.vmem %s1450_s25, 256  ;;  %s1264_s11 = smov [#allocation5]  }
  0x62   : > { %p1170_p9 = scmp.ne.s32.totalorder %s1450_s25, %s1169_s10  ;;  %s1174_s14 = sshll.u32 %s1264_s11, 4  ;;  %s1175_s14 = int_to_ptr.vmem [resolvable:$false] %s1174_s14 }
  0x63   : > { %s1176_s6 = scalar_lea.vmem %s1175_s14, 512  ;;  %p1177_p2 = scmp.lt.s32.totalorder %s1450_s25, %s1175_s14 }
  0x64   : > { %p1172_p1 = pnand %p1170_p9, %p1126_p0  ;;  %p1178_p6 = scmp.lt.s32.totalorder %s1176_s6, %s1169_s10 }
  0x66   : > { %p1173_p5 = pneg %p1172_p1  ;;  %p1179_p8 = por %p1178_p6, %p1177_p2 }
  0x68   : > { %p1180_p10 = pnand %p1179_p8, %p1173_p5 }
  0x6a   : > { %1183 = shalt.err (!%p1180_p10)
}
  0x6b   : > { %s1265_s2 = smov 128   ;;  %s1266_s7 = smov 8  }
  0x6c   : > { %1028 = dma.hbm_to_vmem [thread:$0]  (!%p1405_p11), %s1448_s20, 256, %s1450_s25, %s1454_s0, %s1265_s2, %s1265_s2, %s1266_s7  }
  0x6d   : > { %p1625_p0 = scmp.ne.s32.totalorder %s1618_s23, 0 }
  0x6e   : > { %s1483_s28 = sand.u32 (!%p1625_p0), 1, %s1250_s16   ;;  %p1626_p4 = scmp.ne.s32.totalorder (!%p1625_p0), %s1616_s21, 0 }
  0x6f   : > { %221 = sbr.rel (%p1625_p0) target bundleno = 1276 (0x4fc), region = 36  ;;  %s877_s5 = sshll.u32 (!%p1625_p0), %s1483_s28, 3 }
  0x70   : > { %s224_s12 = scalar_lea.sflag (!%p1625_p0), [#allocation3], %s1483_s28  ;;  %s227_s13 = scalar_lea.vmem (!%p1625_p0), [#allocation2], %s877_s5 }
  0x76   : > { %1229 = dma.done.wait (%p1626_p4), %s224_s12, 128  }
  0x77   : > { %1231 = vsyncadd (%p1626_p4), %s224_s12, 4294967168  ;;  %s232_s0 = sand.u32 1, %s1318_s19   ;;  %s878_s23 = sshll.u32 %s1483_s28, 4 }
  0x78   : > { %s233_s9 = scalar_lea.sflag [#allocation6], %s232_s0  ;;  %s1495_s20 = scalar_lea.vmem [#allocation5], %s878_s23 }
  0x79   : > { %1233 = dma.done.wait (%p1626_p4), %s233_s9, 256  }
  0x7a   : > { %1235 = vsyncadd (%p1626_p4), %s233_s9, 4294967040  ;;  %p1627_p11 = scmp.eq.s32.totalorder %s1318_s19, 0 }
  0x7c   : > { %1237 = dma.done.wait (%p1627_p11), [#allocation6], 2176   ;;  %p1628_p13 = pmov %p1627_p11 }
  0x7d   : > { %v1267_v0 = vmov 0.0   ;;  %vm1268_vm0 = vmmov 0   ;;  %v1078_v1 = vld [vmem:[#allocation7] sm:$0xff]   ;;  %v1079_v2 = vld [vmem:[#allocation7 + $0x8] sm:$0xff]   ;;  %v1080_v3 = vld [vmem:[#allocation7 + $0x10] sm:$0xff]   ;;  %vm326_vm1 = vcmask 654336  }
  0x7e   : > { %1239 = vsyncadd (%p1628_p13), [#allocation6], 4294965120  ;;  %950 = vmatprep.subr.bf16.mxu0 %v1267_v0  ;;  %960 = vmatprep.mubr.msk.bf16.mxu0 %vm1268_vm0, %v1267_v0  ;;  %v1081_v4 = vld [vmem:[#allocation7 + $0x18] sm:$0xff]   ;;  %v1082_v5 = vld [vmem:[#allocation7 + $0x20] sm:$0xff]   ;;  %vm405_vm2 = vcmask 392192   ;;  %vm547_vm3 = vcmask 130048  }
  0x7f   : > { %964 = vmatprep.subr.bf16.mxu1 %v1267_v0  ;;  %970 = vmatprep.mubr.msk.bf16.mxu1 %vm1268_vm0, %v1267_v0  ;;  %v1083_v6 = vld [vmem:[%s227_s13] sm:$0xff]   ;;  %v1084_v7 = vld [vmem:[#allocation7 + $0x28] sm:$0xff]   ;;  %v1087_v21 = vld [vmem:[#allocation7 + $0x40] sm:$0xff]   ;;  %vm688_vm4 = vcmask 261120   ;;  %s921_s7 = sshll.u32 %s1318_s19, 7  ;;  %s269_s12 = scalar_lea.vmem [#allocation8], %s877_s5 }
  0x80   : > { %951 = vmatpush3.bf16.msra.mxu0 %v1078_v1  ;;  %965 = vmatpush3.bf16.msra.mxu1 %v1084_v7  ;;  %v1085_v8 = vld [vmem:[#allocation7 + $0x30] sm:$0xff]   ;;  %v1086_v9 = vld [vmem:[#allocation7 + $0x38] sm:$0xff]   ;;  %v1088_v23 = vld [vmem:[#allocation7 + $0x48] sm:$0xff]   ;;  %s761_s13 = sshll.u32 %s269_s12, 4  ;;  %s1560_s9 = scalar_lea.hbm %s1610_s4, %s921_s7  ;;  %s1562_s13 = int_to_ptr.vmem [resolvable:$true] %s761_s13 }
  0x81   : > { %952 = vmatprep.subr.bf16.mxu0 %v1267_v0  ;;  %966 = vmatprep.subr.bf16.mxu1 %v1267_v0  ;;  %v881_v10 = vld [vmem:[%s1609_s3] ss:$0 sm:$0xff]  ;;  %v889_v25 = vld [vmem:[%s1609_s3 + $0x1] ss:$0 sm:$0xff]  ;;  %v1090_v36 = vld [vmem:[#allocation7 + $0x58] sm:$0xff]   ;;  %s1184_s21 = scalar_lea.vmem %s1562_s13, 128 }
  0x82   : > { %v1089_v24 = vld [vmem:[#allocation7 + $0x50] sm:$0xff]   ;;  %v1091_v38 = vld [vmem:[#allocation7 + $0x60] sm:$0xff]   ;;  %v1092_v39 = vld [vmem:[#allocation7 + $0x68] sm:$0xff]   ;;  %p1185_p3 = scmp.ne.s32.totalorder %s1562_s13, %s1184_s21  ;;  %s1269_s19 = smov [#allocation8]  }
  0x83   : > { %v1093_v40 = vld [vmem:[#allocation7 + $0x70] sm:$0xff]   ;;  %v1094_v57 = vld [vmem:[#allocation7 + $0x78] sm:$0xff]   ;;  %v1095_v58 = vld [vmem:[#allocation7 + $0x80] sm:$0xff]   ;;  %s1188_s5 = sshll.u32 %s1269_s19, 4  ;;  %s1189_s5 = int_to_ptr.vmem [resolvable:$false] %s1188_s5 }
  0x84   : > { %953 = vmatpush3.bf16.msra.mxu0 %v1079_v2  ;;  %967 = vmatpush3.bf16.msra.mxu1 %v1085_v8  ;;  %v894_v41 = vld [vmem:[%s1609_s3 + $0x2] ss:$0 sm:$0xff]  ;;  %v905_v63 = vld [vmem:[%s1609_s3 + $0x3] ss:$0 sm:$0xff]  ;;  %v652_v2 = vld [vmem:[%s1495_s20 + $0x8] sm:$0xff]  ;;  %p1186_p7 = pnand %p1185_p3, %p1391_p12  ;;  %s1190_s25 = scalar_lea.vmem %s1189_s5, 256 }
  0x85   : > { %954 = vmatprep.subr.bf16.mxu0 %v1267_v0  ;;  %968 = vmatprep.subr.bf16.mxu1 %v1267_v0  ;;  %v651_v60 = vld [vmem:[%s1495_s20] sm:$0xff]  ;;  %s748_s20 = scalar_lea.sflag [#allocation4], %s1483_s28  ;;  %p1191_p1 = scmp.lt.s32.totalorder %s1562_s13, %s1189_s5 }
  0x86   : > { %p1187_p9 = pneg %p1186_p7  ;;  %p1192_p5 = scmp.lt.s32.totalorder %s1190_s25, %s1184_s21 }
  0x88   : > { %955 = vmatpush3.bf16.msra.mxu0 %v1080_v3  ;;  %969 = vmatpush3.bf16.msra.mxu1 %v1086_v9  ;;  %p1193_p2 = por %p1192_p5, %p1191_p1 }
  0x89   : > { %956 = vmatprep.subr.bf16.mxu0 %v1267_v0  ;;  %974 = vmatprep.subr.bf16.mxu1 %v1267_v0 }
  0x8a   : > { %p1194_p6 = pnand %p1193_p2, %p1187_p9 }
  0x8c   : > { %957 = vmatpush3.bf16.msra.mxu0 %v1081_v4 }
  0x8d   : > { %958 = vmatprep.subr.bf16.mxu0 %v1267_v0 }
  0x90   : > { %959 = vmatpush3.bf16.msra.mxu0 %v1082_v5 }
  0x91   : > { %984 = vmatprep.subr.bf16.mxu0 %v1267_v0 }
  0x93   : > { %961 = vmatmul.mubr.msk.bf16.vlgmr.msra.gmra.mrb[0].mxu0 %vm326_vm1, %v1083_v6 }
  0x94   : > { %986 = vmatprep.mubr.msk.bf16.mxu0 %vm1268_vm0, %v1267_v0  ;;  %985 = vmatpush3.bf16.msra.mxu0 %v1093_v40 }
  0x95   : > { %1000 = vmatprep.subr.bf16.mxu0 %v1267_v0 }
 0x166   : > { %v364_v11 = vpop.f32.mrb[0].mxu0 }
 0x167   : > { %v365_v12 = vadd.f32 %v881_v10, %v364_v11  ;;  %v962_v13 = vpop.f32.mrb[1].mxu0 }
 0x168   : > { %v367_v14 = vpop.f32.mrb[2].mxu0  ;;  %v906_v13 = vld [vmem:[%s1609_s3 + $0x4] ss:$0 sm:$0xff] }
 0x169   : > { %v371_v15 = vmul.f32 0.2, %v365_v12  ;;  %v368_v16 = vadd.f32 %v881_v10, %v367_v14  ;;  %v963_v17 = vpop.f32.mrb[3].mxu0 }
 0x16b   : > { %v372_v18 = vmul.f32 0.2, %v368_v16  ;;  %v373_v19 = vmax.f32 %v365_v12, %v371_v15 }
 0x16d   : > { %v374_v20 = vmax.f32 %v368_v16, %v372_v18 }
 0x16f   : > { %v375_v22 = vpack.c.bf16 %v374_v20, %v373_v19 }
 0x171   : > { %971 = vmatmul.mubr.msk.bf16.vlgmr.msra.gmra.mrb[0].mxu1 %vm405_vm2, %v375_v22 }
 0x172   : > { %975 = vmatpush3.bf16.msra.mxu1 %v1087_v21  ;;  %980 = vmatprep.mubr.msk.bf16.mxu1 %vm1268_vm0, %v1267_v0 }
 0x173   : > { %976 = vmatprep.subr.bf16.mxu1 %v1267_v0 }
 0x176   : > { %977 = vmatpush3.bf16.msra.mxu1 %v1088_v23 }
 0x177   : > { %978 = vmatprep.subr.bf16.mxu1 %v1267_v0 }
 0x17a   : > { %979 = vmatpush3.bf16.msra.mxu1 %v1089_v24 }
 0x17b   : > { %990 = vmatprep.subr.bf16.mxu1 %v1267_v0 }
 0x244   : > { %v443_v26 = vpop.f32.mrb[0].mxu1 }
 0x245   : > { %v444_v27 = vadd.f32 %v889_v25, %v443_v26  ;;  %v972_v28 = vpop.f32.mrb[1].mxu1 }
 0x246   : > { %v446_v29 = vpop.f32.mrb[2].mxu1 }
 0x247   : > { %v450_v30 = vmul.f32 0.2, %v444_v27  ;;  %v447_v31 = vadd.f32 %v889_v25, %v446_v29  ;;  %v973_v32 = vpop.f32.mrb[3].mxu1 }
 0x249   : > { %v451_v33 = vmul.f32 0.2, %v447_v31  ;;  %v452_v34 = vmax.f32 %v444_v27, %v450_v30 }
 0x24b   : > { %v453_v35 = vmax.f32 %v447_v31, %v451_v33 }
 0x24d   : > { %v454_v37 = vpack.c.bf16 %v453_v35, %v452_v34 }
 0x24f   : > { %981 = vmatmul.mubr.msk.bf16.vlgmr.msra.gmra.mrb[4].mxu1 %vm405_vm2, %v454_v37 }
 0x250   : > { %991 = vmatpush3.bf16.msra.mxu1 %v1090_v36  ;;  %996 = vmatprep.mubr.msk.bf16.mxu1 %vm1268_vm0, %v1267_v0 }
 0x251   : > { %992 = vmatprep.subr.bf16.mxu1 %v1267_v0 }
 0x254   : > { %993 = vmatpush3.bf16.msra.mxu1 %v1091_v38 }
 0x255   : > { %994 = vmatprep.subr.bf16.mxu1 %v1267_v0 }
 0x258   : > { %995 = vmatpush3.bf16.msra.mxu1 %v1092_v39 }
 0x25b   : > { %997 = vmatmul.mubr.msk.bf16.vlgmr.msra.gmra.mrb[8].mxu1 %vm405_vm2, %v454_v37 }
 0x322   : > { %v521_v42 = vpop.f32.mrb[4].mxu1 }
 0x323   : > { %v522_v43 = vadd.f32 %v894_v41, %v521_v42  ;;  %v982_v44 = vpop.f32.mrb[5].mxu1 }
 0x324   : > { %v524_v45 = vpop.f32.mrb[6].mxu1 }
 0x325   : > { %v528_v46 = vmul.f32 0.2, %v522_v43  ;;  %v525_v47 = vadd.f32 %v894_v41, %v524_v45  ;;  %v983_v48 = vpop.f32.mrb[7].mxu1 }
 0x327   : > { %v529_v49 = vmul.f32 0.2, %v525_v47  ;;  %v530_v50 = vmax.f32 %v522_v43, %v528_v46 }
 0x329   : > { %v531_v51 = vmax.f32 %v525_v47, %v529_v49 }
 0x32b   : > { %v532_v52 = vpack.c.bf16 %v531_v51, %v530_v50 }
 0x32d   : > { %987 = vmatmul.mubr.msk.bf16.vlgmr.msra.gmra.mrb[4].mxu0 %vm547_vm3, %v532_v52 }
 0x32e   : > { %v644_v53 = vpop.f32.mrb[8].mxu1  ;;  %1004 = vmatprep.mubr.msk.bf16.mxu0 %vm1268_vm0, %v1267_v0  ;;  %1001 = vmatpush3.bf16.msra.mxu0 %v1094_v57 }
 0x32f   : > { %v998_v54 = vpop.f32.mrb[9].mxu1  ;;  %1002 = vmatprep.subr.bf16.mxu0 %v1267_v0 }
 0x330   : > { %v647_v55 = vpop.f32.mrb[10].mxu1 }
 0x331   : > { %v999_v56 = vpop.f32.mrb[11].mxu1 }
 0x332   : > { %1003 = vmatpush3.bf16.msra.mxu0 %v1095_v58 }
 0x400   : > { %v585_v59 = vpop.f32.mrb[4].mxu0 }
 0x401   : > { %v645_v61 = vadd.f32 %v644_v53, %v585_v59  ;;  %v988_v62 = vpop.f32.mrb[5].mxu0 }
 0x402   : > { %v588_v1 = vpop.f32.mrb[6].mxu0 }
 0x403   : > { %v653_v3 = vadd.f32 %v651_v60, %v645_v61  ;;  %v648_v4 = vadd.f32 %v647_v55, %v588_v1  ;;  %v989_v5 = vpop.f32.mrb[7].mxu0 }
 0x405   : > { %v660_v6 = vadd.f32 %v905_v63, %v653_v3  ;;  %v654_v7 = vadd.f32 %v652_v2, %v648_v4 }
 0x407   : > { %v662_v8 = vmul.f32 0.2, %v660_v6  ;;  %v661_v9 = vadd.f32 %v905_v63, %v654_v7 }
 0x409   : > { %v663_v0 = vmul.f32 0.2, %v661_v9  ;;  %v664_v10 = vmax.f32 %v660_v6, %v662_v8 }
 0x40b   : > { %v665_v11 = vmax.f32 %v661_v9, %v663_v0 }
 0x40d   : > { %v666_v12 = vpack.c.bf16 %v665_v11, %v664_v10 }
 0x40f   : > { %1005 = vmatmul.mubr.msk.bf16.vlgmr.msra.gmra.mrb[8].mxu0 %vm688_vm4, %v666_v12 }
 0x4e2   : > { %v726_v14 = vpop.f32.mrb[8].mxu0 }
 0x4e3   : > { %v727_v15 = vadd.f32 %v906_v13, %v726_v14  ;;  %v1006_v16 = vpop.f32.mrb[9].mxu0 }
 0x4e4   : > { %v729_v17 = vpop.f32.mrb[10].mxu0 }
 0x4e5   : > { %v733_v18 = vmul.f32 0.2, %v727_v15  ;;  %v730_v19 = vadd.f32 %v906_v13, %v729_v17  ;;  %v1007_v20 = vpop.f32.mrb[11].mxu0 }
 0x4e7   : > { %v734_v21 = vmul.f32 0.2, %v730_v19  ;;  %v735_v22 = vmax.f32 %v727_v15, %v733_v18 }
 0x4e9   : > { %v736_v23 = vmax.f32 %v730_v19, %v734_v21 }
 0x4eb   : > { %v925_v24 = vpack.c.bf16 %v736_v23, %v735_v22 }
 0x4ed   : > { %926 = vst [vmem:[%s269_s12] sm:$0xff] %v925_v24  }
 0x4ee   : > { %1197 = shalt.err (!%p1194_p6)
}
 0x4ef   : > { %s1198_s26 = scalar_lea.hbm %s1560_s9, 128  ;;  %s1202_s10 = scalar_lea.hbm %s1610_s4, 256 }
 0x4f0   : > { %p1199_p8 = scmp.ne.s32.totalorder %s1560_s9, %s1198_s26  ;;  %p1203_p4 = scmp.lt.u32.totalorder %s1560_s9, %s1610_s4 }
 0x4f1   : > { %p1204_p11 = scmp.lt.u32.totalorder %s1202_s10, %s1198_s26  ;;  %p1206_p3 = scmp.lt.u32.totalorder %s1198_s26, %s1560_s9 }
 0x4f2   : > { %p1200_p10 = pnand %p1199_p8, %p1391_p12 }
 0x4f3   : > { %p1205_p13 = por %p1204_p11, %p1203_p4 }
 0x4f4   : > { %p1201_p0 = pneg %p1200_p10 }
 0x4f5   : > { %p1207_p7 = por %p1206_p3, %p1205_p13 }
 0x4f7   : > { %p1208_p9 = pnand %p1207_p7, %p1201_p0 }
 0x4f9   : > { %1211 = shalt.err (!%p1208_p9)
}
 0x4fa   : > { %s1270_s6 = smov 64   ;;  %s1271_s2 = smov 4  }
 0x4fb   : > { %1016 = dma.vmem_to_hbm [thread:$0]  (%p1391_p12), %s1562_s13, 128, %s1560_s9, %s748_s20, %s1270_s6, %s1270_s6, %s1271_s2  }
 0x4fc PF: > { %s776_s7 = sand.u32 1, %s1246_s15   ;;  %p1629_p1 = scmp.ne.s32.totalorder %s1617_s22, 0 }
 0x4fd   : > { %p1630_p5 = scmp.ge.s32.totalorder %s1258_s18, 2  ;;  %s777_s12 = scalar_lea.sflag [#allocation4], %s776_s7 }
 0x4ff   : > { %p1030_p2 = pnand %p1630_p5, %p1629_p1 }
 0x501   : > { %1241 = dma.done.wait (!%p1030_p2), %s777_s12, 128  }
 0x502   : > { %1243 = vsyncadd (!%p1030_p2), %s777_s12, 4294967168  ;;  %p20_p6 = scmp.ge.s32.totalorder %s1353_s27, 4   ;;  %s1631_s15 = smov %s1250_s16 }
 0x503   : > { %s1632_s16 = smov %s1254_s17  ;;  %s1633_s17 = smov %s1387_s24 }
 0x504   : > { %s1634_s18 = smov %s1353_s27  ;;  %22 = sbr.rel (!%p20_p6) target bundleno = 10 (0xa), region = 98 }
 0x50b   :  { %782 = vsyncpa [#allocation3], 1 }
 0x50c   :  { %784 = vsyncpa [#allocation3 + $0x1], 1 }
 0x50d   :  { %785 = vsyncpa [#allocation6], 1 }
 0x50e   :  { %787 = vsyncpa [#allocation6 + $0x1], 1 }
 0x50f   :  { %788 = vsyncpa [#allocation4], 1 }
 0x510   :  { %790 = vsyncpa [#allocation4 + $0x1], 1 }

</bundles_post_ra>
